<compile_context>
chip_gen: v5e
topology: v5e:2x2
jax: 0.10.0
libtpu: 0.0.40
codegen_flags: <defaults>
</compile_context>

<pallas_src>
import jax
import jax.numpy as jnp
import numpy as np
from jax.experimental import pallas as pl
from jax.experimental.pallas import tpu as pltpu


def _gelu_exact(x):
    # torch nn.GELU() default is the exact erf formulation (kept for parity).
    return 0.5 * x * (1.0 + jax.lax.erf(x * (1.0 / np.sqrt(2.0))))


# ---------------------------------------------------------------------------
# Kernel
# ---------------------------------------------------------------------------
def icb_kernel(x_ref, halo_ref, w12_ref, w2p_ref, w2n_ref,
               b1_ref, b2_ref, w3_ref, b3_ref, o_ref, acc_ref):
    k = pl.program_id(2)
    nk = pl.num_programs(2)
    th = b1_ref.shape[1]                 # hidden chunk handled this step

    xb = x_ref[0]                        # (TN, C) bf16 tile of x
    halo = halo_ref[0, 0]                # (2, C) bf16: [row before tile, row after tile]
    prev_row = halo[0:1]                 # (1, C)  (zeros at sequence start)
    next_row = halo[1:2]                 # (1, C)  (zeros at sequence end)

    # Sequence shifts for the k=3 conv: splice the neighbouring tile's halo row
    # onto a tile slice (no roll, no iota/select patching).
    x_prev = jnp.concatenate([prev_row, xb[:-1]], axis=0)   # row n holds x[n-1]
    x_next = jnp.concatenate([xb[1:], next_row], axis=0)    # row n holds x[n+1]

    @pl.when(k == 0)
    def _():
        acc_ref[...] = jnp.zeros_like(acc_ref)

    # conv1 (1x1) fused with the conv2 center tap: one (TN,C)x(C,2*TH) matmul.
    xc = jnp.dot(xb, w12_ref[...], preferred_element_type=jnp.float32)       # (TN, 2*TH)
    x1 = xc[:, :th] + b1_ref[...]                                            # (TN, TH)
    x2 = (xc[:, th:]
          + jnp.dot(x_prev, w2p_ref[...], preferred_element_type=jnp.float32)
          + jnp.dot(x_next, w2n_ref[...], preferred_element_type=jnp.float32)
          + b2_ref[...])                                                     # (TN, TH)

    # out = x1 * gelu(x2) + x2 * gelu(x1)   (Dropout p=0 -> identity)
    g1 = _gelu_exact(x1)
    g2 = _gelu_exact(x2)
    out = (x1 * g2 + x2 * g1).astype(jnp.bfloat16)                           # (TN, TH)

    # conv3 (1x1, H->C): accumulate this hidden chunk's contribution.
    acc_ref[...] += jnp.dot(out, w3_ref[...], preferred_element_type=jnp.float32)

    @pl.when(k == nk - 1)
    def _():
        o_ref[0] = (acc_ref[...] + b3_ref[...]).astype(o_ref.dtype)


# ---------------------------------------------------------------------------
# VMEM-budget-aware tile planning
# ---------------------------------------------------------------------------
def _round_up(a, m):
    return (a + m - 1) // m * m


def _vmem_capacity_bytes():
    try:
        return int(pltpu.get_tpu_info().vmem_capacity_bytes)
    except Exception:
        return 64 << 20          # conservative default (v7x: 64 MiB per TC)


def _vmem_usage(tn, th, C, H):
    """Rough per-kernel VMEM footprint in bytes for a (tn, th) tile plan."""
    wbuf = 1 if th == H else 2           # weights single-buffered only when grid-invariant
    return (2 * tn * C * 2               # x tile (bf16), double-buffered
            + 2 * tn * C * 4             # y tile (f32), double-buffered
            + 2 * 2 * C * 2              # packed halo rows
            + tn * C * 4                 # conv3 accumulator scratch
            + wbuf * 5 * C * th * 2      # w12/w2p/w2n/w3 chunk blocks (bf16)
            + wbuf * (3 * th + C) * 4    # bias blocks (f32)
            + 24 * tn * th)              # f32 gating intermediates (xc, x1, x2, g1, g2)


def _plan_tiles(N, C, H, tile_n=None, tile_h=None):
    cap = _vmem_capacity_bytes()
    budget = max(int(cap * 0.70), 8 << 20)
    # 128 MiB parts (v5e/v6e): big sequence tiles amortize per-step overhead and
    # feed the MXU M dim; 64 MiB v7x: cap TN at 256 and chunk H instead.
    target_tn = 1024 if cap >= (96 << 20) else 256

    if tile_h is None:
        tile_h = H
    if tile_n is None:
        tile_n = min(max(16, _round_up(N, 16)), target_tn)
        while _vmem_usage(tile_n, tile_h, C, H) > budget:
            if tile_h > 256 and tile_h % 2 == 0:
                tile_h //= 2                                   # chunk H first (keep M / output tile fat)
            elif tile_n > 16:
                tile_n = max(16, (tile_n // 2 // 16) * 16)     # then shrink the sequence tile
            else:
                break
    assert H % tile_h == 0, "hidden_features must be divisible by the H chunk"

    est = _vmem_usage(tile_n, tile_h, C, H)
    vmem_limit = int(min(cap, max(32 << 20, 2 * est)))
    return tile_n, tile_h, vmem_limit


def _make_spec(shape, index_map, single_buffer):
    if single_buffer:
        try:
            # Grid-invariant block: don't waste VMEM double-buffering it.
            return pl.BlockSpec(shape, index_map, pipeline_mode=pl.Buffered(1))
        except Exception:
            pass   # older/newer API without pipeline_mode -> default buffering
    return pl.BlockSpec(shape, index_map)


# ---------------------------------------------------------------------------
# Host wrapper
# ---------------------------------------------------------------------------
def icb_forward(x, params, tile_n=None, tile_h=None, out_dtype=jnp.float32):
    """x: (B, N, C) float32.  params: dict of weights (see init_icb_params)."""
    B, N, C = x.shape
    H = params["b1"].shape[1]

    tile_n, tile_h, vmem_limit = _plan_tiles(N, C, H, tile_n, tile_h)
    nk = H // tile_h

    # Stream x (and the halo rows) in bf16: the MXU consumes bf16 anyway, and
    # this halves the per-step HBM read of the x tile.
    xb = x.astype(jnp.bfloat16)

    # Pad N up to a multiple of tile_n.  Pad rows are zeros, which matches the
    # Conv1d(padding=1) semantics at the sequence end; their outputs are sliced off.
    Np = _round_up(N, tile_n)
    if Np != N:
        xb = jnp.pad(xb, ((0, 0), (0, Np - N), (0, 0)))
    nj = Np // tile_n

    # Halo rows for the k=3 conv across tile boundaries, packed into a single
    # (B, nj, 2, C) input (one tiny DMA per step).  Built from strided slices
    # plus a zeros row (no full-array pad materialization).
    last_rows = xb[:, tile_n - 1::tile_n, :]                     # (B, nj, C) last row of each tile
    first_rows = xb[:, ::tile_n, :]                              # (B, nj, C) first row of each tile
    zrow = jnp.zeros((B, 1, C), xb.dtype)
    prev_rows = jnp.concatenate([zrow, last_rows[:, :-1]], axis=1)
    next_rows = jnp.concatenate([first_rows[:, 1:], zrow], axis=1)
    halo = jnp.stack([prev_rows, next_rows], axis=2)             # (B, nj, 2, C)

    # Fused stage-1 weight, chunk-interleaved so each H-chunk block along the
    # lane axis holds [conv1 chunk | conv2-center chunk].
    w1, w2c = params["w1"], params["w2c"]
    w12 = jnp.concatenate(
        [w1.reshape(C, nk, tile_h), w2c.reshape(C, nk, tile_h)], axis=2
    ).reshape(C, 2 * H)

    single_w = (nk == 1)      # weight blocks are grid-invariant only if H is not chunked
    th = tile_h
    wspec = lambda shape, imap: _make_spec(shape, imap, single_w)

    out = pl.pallas_call(
        icb_kernel,
        out_shape=jax.ShapeDtypeStruct((B, Np, C), out_dtype),
        grid_spec=pltpu.PrefetchScalarGridSpec(
            num_scalar_prefetch=0,
            grid=(B, nj, nk),
            in_specs=[
                pl.BlockSpec((1, tile_n, C), lambda b, j, k: (b, j, 0)),     # x tile (bf16)
                pl.BlockSpec((1, 1, 2, C), lambda b, j, k: (b, j, 0, 0)),    # packed halo rows
                wspec((C, 2 * th), lambda b, j, k: (0, k)),                  # [conv1 | conv2 center]
                wspec((C, th), lambda b, j, k: (0, k)),                      # conv2 tap x[n-1]
                wspec((C, th), lambda b, j, k: (0, k)),                      # conv2 tap x[n+1]
                wspec((1, th), lambda b, j, k: (0, k)),                      # b1
                wspec((1, th), lambda b, j, k: (0, k)),                      # b2
                wspec((th, C), lambda b, j, k: (k, 0)),                      # conv3 weight
                wspec((1, C), lambda b, j, k: (0, 0)),                       # b3
            ],
            out_specs=pl.BlockSpec((1, tile_n, C), lambda b, j, k: (b, j, 0)),
            scratch_shapes=[pltpu.VMEM((tile_n, C), jnp.float32)],           # conv3 accumulator
        ),
        compiler_params=pltpu.CompilerParams(
            dimension_semantics=("parallel", "parallel", "arbitrary"),
            vmem_limit_bytes=vmem_limit),
    )(xb, halo, w12, params["w2p"], params["w2n"],
      params["b1"], params["b2"], params["w3"], params["b3"])

    if Np != N:
        out = out[:, :N]
    return out


# ---------------------------------------------------------------------------
# Parameters & pure-JAX reference
# ---------------------------------------------------------------------------
def init_icb_params(key, in_features, hidden_features):
    """Deterministic synthetic weights matching the torch Conv1d shapes:
       conv1.weight (H, C, 1), conv2.weight (H, C, 3), conv3.weight (C, H, 1).
       Stored pre-transposed for channels-last matmuls; matmul weights in bf16
       (MXU fast path), biases in f32."""
    C, H = in_features, hidden_features
    ks = jax.random.split(key, 6)
    s1 = 1.0 / np.sqrt(C * 1)
    s2 = 1.0 / np.sqrt(C * 3)
    s3 = 1.0 / np.sqrt(H * 1)
    w1_t = jax.random.uniform(ks[0], (H, C, 1), jnp.float32, -s1, s1)
    b1 = jax.random.uniform(ks[1], (H,), jnp.float32, -s1, s1)
    w2_t = jax.random.uniform(ks[2], (H, C, 3), jnp.float32, -s2, s2)
    b2 = jax.random.uniform(ks[3], (H,), jnp.float32, -s2, s2)
    w3_t = jax.random.uniform(ks[4], (C, H, 1), jnp.float32, -s3, s3)
    b3 = jax.random.uniform(ks[5], (C,), jnp.float32, -s3, s3)

    w1 = jnp.transpose(w1_t[:, :, 0], (1, 0))      # (C, H)
    w2 = jnp.transpose(w2_t, (2, 1, 0))            # (3, C, H): taps for x[n-1], x[n], x[n+1]
    w3 = jnp.transpose(w3_t[:, :, 0], (1, 0))      # (H, C)
    bf16 = jnp.bfloat16
    return {
        "w1": w1.astype(bf16),       # conv1 (1x1)
        "w2c": w2[1].astype(bf16),   # conv2 center tap
        "w2p": w2[0].astype(bf16),   # conv2 tap for x[n-1]
        "w2n": w2[2].astype(bf16),   # conv2 tap for x[n+1]
        "w3": w3.astype(bf16),       # conv3 (1x1)
        "b1": b1.reshape(1, H),
        "b2": b2.reshape(1, H),
        "b3": b3.reshape(1, C),
    }


def icb_reference(x, params):
    """Pure-JAX reference of the same math (bf16 MXU inputs, f32 accumulation)."""
    f32 = jnp.float32
    w1 = params["w1"].astype(f32)
    w2c = params["w2c"].astype(f32)
    w2p = params["w2p"].astype(f32)
    w2n = params["w2n"].astype(f32)
    w3 = params["w3"].astype(f32)
    b1, b2, b3 = params["b1"], params["b2"], params["b3"]

    xb = x.astype(jnp.bfloat16).astype(f32)        # match kernel's bf16 streaming
    x1 = jnp.einsum("bnc,ch->bnh", xb, w1) + b1[0]
    xpad = jnp.pad(xb, ((0, 0), (1, 1), (0, 0)))
    x2 = (jnp.einsum("bnc,ch->bnh", xpad[:, :-2], w2p)
          + jnp.einsum("bnc,ch->bnh", xb, w2c)
          + jnp.einsum("bnc,ch->bnh", xpad[:, 2:], w2n) + b2[0])
    g1 = _gelu_exact(x1)
    g2 = _gelu_exact(x2)
    out = (x1 * g2 + x2 * g1).astype(jnp.bfloat16).astype(f32)
    return jnp.einsum("bnh,hc->bnc", out, w3) + b3[0]


if __name__ == "__main__":
    B, N, C, H = 2, 16, 4, 32   # batch, seq len, in_features, hidden_features
    key = jax.random.PRNGKey(0)
    kx, kp = jax.random.split(key)
    x = jax.random.normal(kx, (B, N, C), jnp.float32)
    params = init_icb_params(kp, C, H)

    # tile_n=8 -> 2 sequence tiles per batch element, exercising the halo path.
    y = icb_forward(x, params, tile_n=8)
    y = jax.block_until_ready(y)

    y_ref = icb_reference(x, params)
    np.testing.assert_allclose(np.asarray(y), np.asarray(y_ref),
                               rtol=2e-3, atol=2e-3)
    print("KERNEL_OK")
</pallas_src>

<mosaic_0001>
module attributes {stable_mosaic.version = 11 : i64} {
  func.func @icb_kernel(%arg0: i32, %arg1: i32, %arg2: i32, %arg3: memref<1x8x4xbf16, #tpu.memory_space<vmem>>, %arg4: memref<1x1x2x4xbf16, #tpu.memory_space<vmem>>, %arg5: memref<4x64xbf16, #tpu.memory_space<vmem>>, %arg6: memref<4x32xbf16, #tpu.memory_space<vmem>>, %arg7: memref<4x32xbf16, #tpu.memory_space<vmem>>, %arg8: memref<1x32xf32, #tpu.memory_space<vmem>>, %arg9: memref<1x32xf32, #tpu.memory_space<vmem>>, %arg10: memref<32x4xbf16, #tpu.memory_space<vmem>>, %arg11: memref<1x4xf32, #tpu.memory_space<vmem>>, %arg12: memref<1x8x4xf32, #tpu.memory_space<vmem>>, %arg13: memref<8x4xf32, #tpu.memory_space<vmem>>) attributes {dimension_semantics = [#tpu.dimension_semantics<parallel>, #tpu.dimension_semantics<parallel>, #tpu.dimension_semantics<arbitrary>], iteration_bounds = array<i64: 2, 2, 1>, scalar_prefetch = 0 : i64, scratch_operands = 1 : i64, tpu.core_type = #tpu.core_type<tc>, window_params = [{transform_indices = @transform_0, window_bounds = array<i64: 1, 8, 4>}, {transform_indices = @transform_1, window_bounds = array<i64: 1, 1, 2, 4>}, {pipeline_mode = #tpu.pipeline_mode<synchronous>, transform_indices = @transform_2, window_bounds = array<i64: 4, 64>}, {pipeline_mode = #tpu.pipeline_mode<synchronous>, transform_indices = @transform_3, window_bounds = array<i64: 4, 32>}, {pipeline_mode = #tpu.pipeline_mode<synchronous>, transform_indices = @transform_4, window_bounds = array<i64: 4, 32>}, {pipeline_mode = #tpu.pipeline_mode<synchronous>, transform_indices = @transform_5, window_bounds = array<i64: 1, 32>}, {pipeline_mode = #tpu.pipeline_mode<synchronous>, transform_indices = @transform_6, window_bounds = array<i64: 1, 32>}, {pipeline_mode = #tpu.pipeline_mode<synchronous>, transform_indices = @transform_7, window_bounds = array<i64: 32, 4>}, {pipeline_mode = #tpu.pipeline_mode<synchronous>, transform_indices = @transform_8, window_bounds = array<i64: 1, 4>}, {transform_indices = @transform_9, window_bounds = array<i64: 1, 8, 4>}]} {
    %c0 = arith.constant 0 : index
    %c0_0 = arith.constant 0 : index
    %c0_1 = arith.constant 0 : index
    %0 = vector.load %arg3[%c0, %c0_0, %c0_1] : memref<1x8x4xbf16, #tpu.memory_space<vmem>>, vector<1x8x4xbf16>
    %1 = vector.shape_cast %0 : vector<1x8x4xbf16> to vector<8x4xbf16>
    %c0_2 = arith.constant 0 : index
    %c0_3 = arith.constant 0 : index
    %c0_4 = arith.constant 0 : index
    %c0_5 = arith.constant 0 : index
    %2 = vector.load %arg4[%c0_2, %c0_3, %c0_4, %c0_5] : memref<1x1x2x4xbf16, #tpu.memory_space<vmem>>, vector<1x1x2x4xbf16>
    %3 = vector.shape_cast %2 : vector<1x1x2x4xbf16> to vector<2x4xbf16>
    %4 = vector.extract_strided_slice %3 {offsets = [0, 0], sizes = [1, 4], strides = [1, 1]} : vector<2x4xbf16> to vector<1x4xbf16>
    %5 = vector.extract_strided_slice %3 {offsets = [1, 0], sizes = [1, 4], strides = [1, 1]} : vector<2x4xbf16> to vector<1x4xbf16>
    %6 = vector.extract_strided_slice %1 {offsets = [0, 0], sizes = [7, 4], strides = [1, 1]} : vector<8x4xbf16> to vector<7x4xbf16>
    %7 = tpu.concatenate %4, %6 in 0 : vector<1x4xbf16>, vector<7x4xbf16> -> vector<8x4xbf16>
    %8 = vector.extract_strided_slice %1 {offsets = [1, 0], sizes = [7, 4], strides = [1, 1]} : vector<8x4xbf16> to vector<7x4xbf16>
    %9 = tpu.concatenate %8, %5 in 0 : vector<7x4xbf16>, vector<1x4xbf16> -> vector<8x4xbf16>
    %c0_i32 = arith.constant 0 : i32
    %10 = arith.cmpi eq, %arg2, %c0_i32 : i32
    %11 = arith.extui %10 : i1 to i32
    %c0_i32_6 = arith.constant 0 : i32
    %12 = arith.cmpi ne, %11, %c0_i32_6 : i32
    scf.if %12 {
      %cst_34 = arith.constant 0.000000e+00 : f32
      %57 = vector.broadcast %cst_34 : f32 to vector<8x4xf32>
      %c0_35 = arith.constant 0 : index
      %c0_36 = arith.constant 0 : index
      %58 = vector.load %arg13[%c0_35, %c0_36] : memref<8x4xf32, #tpu.memory_space<vmem>>, vector<8x4xf32>
      tpu.vector_store %arg13[%c0_35, %c0_36], %57 {strides = array<i32>} : memref<8x4xf32, #tpu.memory_space<vmem>>, vector<8x4xf32>,
    } else {
    }
    %c0_7 = arith.constant 0 : index
    %c0_8 = arith.constant 0 : index
    %13 = vector.load %arg5[%c0_7, %c0_8] : memref<4x64xbf16, #tpu.memory_space<vmem>>, vector<4x64xbf16>
    %cst = arith.constant dense<0.000000e+00> : vector<8x64xf32>
    %14 = tpu.matmul %1, %13, %cst {dimension_numbers = #tpu.dot_dimension_numbers<[1], [0], [0], [1], [0, 0, 1, 1], [], []>} : vector<8x4xbf16>, vector<4x64xbf16>, vector<8x64xf32> -> vector<8x64xf32>
    %15 = vector.extract_strided_slice %14 {offsets = [0, 0], sizes = [8, 32], strides = [1, 1]} : vector<8x64xf32> to vector<8x32xf32>
    %c0_9 = arith.constant 0 : index
    %c0_10 = arith.constant 0 : index
    %16 = vector.load %arg8[%c0_9, %c0_10] : memref<1x32xf32, #tpu.memory_space<vmem>>, vector<1x32xf32>
    %17 = vector.broadcast %16 : vector<1x32xf32> to vector<8x32xf32>
    %18 = arith.addf %15, %17 : vector<8x32xf32>
    %19 = vector.extract_strided_slice %14 {offsets = [0, 32], sizes = [8, 32], strides = [1, 1]} : vector<8x64xf32> to vector<8x32xf32>
    %c0_11 = arith.constant 0 : index
    %c0_12 = arith.constant 0 : index
    %20 = vector.load %arg6[%c0_11, %c0_12] : memref<4x32xbf16, #tpu.memory_space<vmem>>, vector<4x32xbf16>
    %cst_13 = arith.constant dense<0.000000e+00> : vector<8x32xf32>
    %21 = tpu.matmul %7, %20, %cst_13 {dimension_numbers = #tpu.dot_dimension_numbers<[1], [0], [0], [1], [0, 0, 1, 1], [], []>} : vector<8x4xbf16>, vector<4x32xbf16>, vector<8x32xf32> -> vector<8x32xf32>
    %22 = arith.addf %19, %21 : vector<8x32xf32>
    %c0_14 = arith.constant 0 : index
    %c0_15 = arith.constant 0 : index
    %23 = vector.load %arg7[%c0_14, %c0_15] : memref<4x32xbf16, #tpu.memory_space<vmem>>, vector<4x32xbf16>
    %cst_16 = arith.constant dense<0.000000e+00> : vector<8x32xf32>
    %24 = tpu.matmul %9, %23, %cst_16 {dimension_numbers = #tpu.dot_dimension_numbers<[1], [0], [0], [1], [0, 0, 1, 1], [], []>} : vector<8x4xbf16>, vector<4x32xbf16>, vector<8x32xf32> -> vector<8x32xf32>
    %25 = arith.addf %22, %24 : vector<8x32xf32>
    %c0_17 = arith.constant 0 : index
    %c0_18 = arith.constant 0 : index
    %26 = vector.load %arg9[%c0_17, %c0_18] : memref<1x32xf32, #tpu.memory_space<vmem>>, vector<1x32xf32>
    %27 = vector.broadcast %26 : vector<1x32xf32> to vector<8x32xf32>
    %28 = arith.addf %25, %27 : vector<8x32xf32>
    %cst_19 = arith.constant 5.000000e-01 : f32
    %29 = vector.broadcast %cst_19 : f32 to vector<8x32xf32>
    %30 = arith.mulf %29, %18 : vector<8x32xf32>
    %cst_20 = arith.constant 0.707106769 : f32
    %31 = vector.broadcast %cst_20 : f32 to vector<8x32xf32>
    %32 = arith.mulf %18, %31 : vector<8x32xf32>
    %33 = math.erf %32 : vector<8x32xf32>
    %cst_21 = arith.constant 1.000000e+00 : f32
    %34 = vector.broadcast %cst_21 : f32 to vector<8x32xf32>
    %35 = arith.addf %34, %33 : vector<8x32xf32>
    %36 = arith.mulf %30, %35 : vector<8x32xf32>
    %cst_22 = arith.constant 5.000000e-01 : f32
    %37 = vector.broadcast %cst_22 : f32 to vector<8x32xf32>
    %38 = arith.mulf %37, %28 : vector<8x32xf32>
    %cst_23 = arith.constant 0.707106769 : f32
    %39 = vector.broadcast %cst_23 : f32 to vector<8x32xf32>
    %40 = arith.mulf %28, %39 : vector<8x32xf32>
    %41 = math.erf %40 : vector<8x32xf32>
    %cst_24 = arith.constant 1.000000e+00 : f32
    %42 = vector.broadcast %cst_24 : f32 to vector<8x32xf32>
    %43 = arith.addf %42, %41 : vector<8x32xf32>
    %44 = arith.mulf %38, %43 : vector<8x32xf32>
    %45 = arith.mulf %18, %44 : vector<8x32xf32>
    %46 = arith.mulf %28, %36 : vector<8x32xf32>
    %47 = arith.addf %45, %46 : vector<8x32xf32>
    %48 = arith.truncf %47 : vector<8x32xf32> to vector<8x32xbf16>
    %c0_25 = arith.constant 0 : index
    %c0_26 = arith.constant 0 : index
    %49 = vector.load %arg13[%c0_25, %c0_26] : memref<8x4xf32, #tpu.memory_space<vmem>>, vector<8x4xf32>
    %c0_27 = arith.constant 0 : index
    %c0_28 = arith.constant 0 : index
    %50 = vector.load %arg10[%c0_27, %c0_28] : memref<32x4xbf16, #tpu.memory_space<vmem>>, vector<32x4xbf16>
    %cst_29 = arith.constant dense<0.000000e+00> : vector<8x4xf32>
    %51 = tpu.matmul %48, %50, %cst_29 {dimension_numbers = #tpu.dot_dimension_numbers<[1], [0], [0], [1], [0, 0, 1, 1], [], []>} : vector<8x32xbf16>, vector<32x4xbf16>, vector<8x4xf32> -> vector<8x4xf32>
    %52 = arith.addf %49, %51 : vector<8x4xf32>
    %c0_30 = arith.constant 0 : index
    %c0_31 = arith.constant 0 : index
    %53 = vector.load %arg13[%c0_30, %c0_31] : memref<8x4xf32, #tpu.memory_space<vmem>>, vector<8x4xf32>
    tpu.vector_store %arg13[%c0_30, %c0_31], %52 {strides = array<i32>} : memref<8x4xf32, #tpu.memory_space<vmem>>, vector<8x4xf32>,
    %c0_i32_32 = arith.constant 0 : i32
    %54 = arith.cmpi eq, %arg2, %c0_i32_32 : i32
    %55 = arith.extui %54 : i1 to i32
    %c0_i32_33 = arith.constant 0 : i32
    %56 = arith.cmpi ne, %55, %c0_i32_33 : i32
    scf.if %56 {
      %c0_34 = arith.constant 0 : index
      %c0_35 = arith.constant 0 : index
      %57 = vector.load %arg13[%c0_34, %c0_35] : memref<8x4xf32, #tpu.memory_space<vmem>>, vector<8x4xf32>
      %c0_36 = arith.constant 0 : index
      %c0_37 = arith.constant 0 : index
      %58 = vector.load %arg11[%c0_36, %c0_37] : memref<1x4xf32, #tpu.memory_space<vmem>>, vector<1x4xf32>
      %59 = vector.broadcast %58 : vector<1x4xf32> to vector<8x4xf32>
      %60 = arith.addf %57, %59 : vector<8x4xf32>
      %c0_38 = arith.constant 0 : index
      %c0_39 = arith.constant 0 : index
      %c0_40 = arith.constant 0 : index
      %61 = vector.load %arg12[%c0_38, %c0_39, %c0_40] : memref<1x8x4xf32, #tpu.memory_space<vmem>>, vector<1x8x4xf32>
      %62 = vector.shape_cast %61 : vector<1x8x4xf32> to vector<8x4xf32>
      %63 = vector.shape_cast %60 : vector<8x4xf32> to vector<1x8x4xf32>
      tpu.vector_store %arg12[%c0_38, %c0_39, %c0_40], %63 {strides = array<i32>} : memref<1x8x4xf32, #tpu.memory_space<vmem>>, vector<1x8x4xf32>,
    } else {
    }
    return
  }
  func.func @transform_0(%arg0: i32, %arg1: i32, %arg2: i32) -> (i32, i32, i32) {
    %c0_i32 = arith.constant 0 : i32
    %c0_i32_0 = arith.constant 0 : i32
    return %arg0, %arg1, %c0_i32 : i32, i32, i32
  }
  func.func @transform_1(%arg0: i32, %arg1: i32, %arg2: i32) -> (i32, i32, i32, i32) {
    %c0_i32 = arith.constant 0 : i32
    %c0_i32_0 = arith.constant 0 : i32
    %c0_i32_1 = arith.constant 0 : i32
    return %arg0, %arg1, %c0_i32, %c0_i32_0 : i32, i32, i32, i32
  }
  func.func @transform_2(%arg0: i32, %arg1: i32, %arg2: i32) -> (i32, i32) {
    %c0_i32 = arith.constant 0 : i32
    %c0_i32_0 = arith.constant 0 : i32
    return %c0_i32, %arg2 : i32, i32
  }
  func.func @transform_3(%arg0: i32, %arg1: i32, %arg2: i32) -> (i32, i32) {
    %c0_i32 = arith.constant 0 : i32
    %c0_i32_0 = arith.constant 0 : i32
    return %c0_i32, %arg2 : i32, i32
  }
  func.func @transform_4(%arg0: i32, %arg1: i32, %arg2: i32) -> (i32, i32) {
    %c0_i32 = arith.constant 0 : i32
    %c0_i32_0 = arith.constant 0 : i32
    return %c0_i32, %arg2 : i32, i32
  }
  func.func @transform_5(%arg0: i32, %arg1: i32, %arg2: i32) -> (i32, i32) {
    %c0_i32 = arith.constant 0 : i32
    %c0_i32_0 = arith.constant 0 : i32
    return %c0_i32, %arg2 : i32, i32
  }
  func.func @transform_6(%arg0: i32, %arg1: i32, %arg2: i32) -> (i32, i32) {
    %c0_i32 = arith.constant 0 : i32
    %c0_i32_0 = arith.constant 0 : i32
    return %c0_i32, %arg2 : i32, i32
  }
  func.func @transform_7(%arg0: i32, %arg1: i32, %arg2: i32) -> (i32, i32) {
    %c0_i32 = arith.constant 0 : i32
    %c0_i32_0 = arith.constant 0 : i32
    return %arg2, %c0_i32 : i32, i32
  }
  func.func @transform_8(%arg0: i32, %arg1: i32, %arg2: i32) -> (i32, i32) {
    %c0_i32 = arith.constant 0 : i32
    %c0_i32_0 = arith.constant 0 : i32
    %c0_i32_1 = arith.constant 0 : i32
    return %c0_i32, %c0_i32_0 : i32, i32
  }
  func.func @transform_9(%arg0: i32, %arg1: i32, %arg2: i32) -> (i32, i32, i32) {
    %c0_i32 = arith.constant 0 : i32
    %c0_i32_0 = arith.constant 0 : i32
    return %arg0, %arg1, %c0_i32 : i32, i32, i32
  }
}

</mosaic_0001>

<bundles_post_ra>
// kernel: tpu_custom_call.1
= control target key start
LH: loop header
LB: loop body
LE: loop exit
PB: predicated region body
PF: predicated region fallthrough
CT: control target
= control target key end

     0   :  { %s1136_s30 = smov 0   ;;  %s1138_s10 = smov 0   ;;  %s1234_s0 = inlined_call_operand.vmem [shape: bf16[2,16,4], index: 0, kind: input, shape index: {}]   ;;  %s1235_s1 = inlined_call_operand.vmem [shape: bf16[2,2,2,4], index: 1, kind: input, shape index: {}]   ;;  %s1236_s2 = inlined_call_operand.vmem [shape: bf16[4,64], index: 2, kind: input, shape index: {}]   ;;  %s1237_s3 = inlined_call_operand.vmem [shape: bf16[4,32], index: 3, kind: input, shape index: {}]   ;;  %s1238_s4 = inlined_call_operand.vmem [shape: bf16[4,32], index: 4, kind: input, shape index: {}]   ;;  %s1239_s5 = inlined_call_operand.vmem [shape: f32[1,32], index: 5, kind: input, shape index: {}]   ;;  %s1240_s6 = inlined_call_operand.vmem [shape: f32[1,32], index: 6, kind: input, shape index: {}]   ;;  %s1241_s7 = inlined_call_operand.vmem [shape: bf16[32,4], index: 7, kind: input, shape index: {}]   ;;  %s1242_s8 = inlined_call_operand.vmem [shape: f32[1,4], index: 8, kind: input, shape index: {}]   ;;  %s1243_s9 = inlined_call_operand.vmem [shape: f32[2,16,4], index: 9, kind: output, shape index: {}]  }
   0x1   :  { %s1140_s11 = smov 0   ;;  %s1142_s12 = smov 0  }
   0x2   :  { %s1144_s13 = smov 0  }
   0x3 LB: > { %s34_s14 = sadd.s32 1, %s1073_s11  ;;  %s38_s15 = sadd.s32 1, %s1077_s12  ;;  %s1081_s13 = sphi %s1144_s13, %s19_s13   ;;  %s1077_s12 = sphi %s1142_s12, %s1247_s12   ;;  %s1073_s11 = sphi %s1140_s11, %s1246_s11   ;;  %s1069_s10 = sphi %s1138_s10, %s1245_s10   ;;  %s1065_s30 = sphi %s1136_s30, %s1244_s30  }
   0x4   : > { %p36_p0 = scmp.ge.s32.totalorder %s34_s14, 2  ;;  %p969_p1 = scmp.ge.s32.totalorder %s1081_s13, 1 }
   0x5   : > { %p381_p2 = scmp.lt.s32.totalorder %s1081_s13, 5 }
   0x6   : > { %s1249_s14 = smov (%p36_p0, %s34_s14), 0  ;;  %s1251_s15 = smov (!%p36_p0, %s38_s15), %s1077_s12 }
   0x7   : > { %p382_p3 = pnand %p969_p1, %p381_p2  ;;  %p40_p4 = scmp.ge.s32.totalorder %s1251_s15, 2 }
   0x8   : > { %p453_p5 = scmp.lt.s32.totalorder (!%p382_p3), %s1069_s10, 1  ;;  %p455_p6 = scmp.lt.s32.totalorder (!%p382_p3), %s1065_s30, 1 }
   0x9   : > { %s1253_s15 = smov (%p40_p4, %s1251_s15), 0  ;;  %385 = sbr.rel (%p382_p3) target bundleno = 583 (0x247), region = 56 }
   0xa   : > { %s1083_s17 = smov (!%p382_p3), 32   ;;  %s1084_s20 = smov (!%p382_p3), 96  }
   0xe   : > { %v536_v0 = vld [vmem:[%s1236_s2] sm:$0x3]  ;;  %vm541_vm0 = vcmask 1041408   ;;  %s1255_s10 = smov (!%p453_p5, %s1069_s10), 1  ;;  %s1257_s30 = smov (!%p455_p6, %s1065_s30), 1  ;;  %vm534_vm1 = vcmask 31744  }
   0xf   : > { %v543_v1 = vsel %vm541_vm0, %v536_v0, 0  ;;  %v563_v2 = vld [vmem:[%s1237_s3] sm:$0x3]  ;;  %s970_s22 = sshll.u32 %s1255_s10, 1  ;;  %vm514_vm2 = vcmask 1040384   ;;  %vm526_vm4 = vcmask 1043456  }
  0x10   : > { %v588_v3 = vld [vmem:[%s1238_s4] sm:$0x3]  ;;  %552 = vmatpush.bf16.msra.mxu0 %v543_v1  ;;  %v568_v4 = vsel %vm541_vm0, %v563_v2, 0  ;;  %s1175_s23 = sadd.s32 %s970_s22, %s1257_s30  ;;  %vm515_vm3 = vsmask.f32 256 }
  0x11   : > { %v593_v5 = vsel %vm541_vm0, %v588_v3, 0  ;;  %577 = vmatpush.bf16.msra.mxu1 %v568_v4  ;;  %s971_s24 = sshll.u32 %s1175_s23, 2  ;;  %s467_s16 = scalar_lea.vmem %s1235_s1, %s1175_s23  ;;  %vm527_vm5 = vsmask.f32 3328  ;;  %vm516_vm6 = vmand %vm514_vm2, %vm515_vm3  ;;  %v1037_v19 = vld [vmem:[%s1240_s6] ss:$0 sm:$0xff] }
  0x12   : > { %602 = vmatpush.bf16.msra.mxu2 %v593_v5  ;;  %s460_s27 = scalar_lea.vmem %s1234_s0, %s971_s24  ;;  %v502_v8 = vld [vmem:[%s467_s16] sm:$0x1]  ;;  %vm528_vm7 = vmand %vm526_vm4, %vm527_vm5  ;;  %616 = vrot.lane.b32.xlu1 %v1037_v19, %s1083_s17  ;;  %vm741_vm0 = vcmask 261120   ;;  %s974_s26 = sshll.u32 %s1175_s23, 3 }
  0x13   : > { %v501_v6 = vld [vmem:[%s460_s27] sm:$0xf]  ;;  %523 = vst [vmem:[#allocation1 + $0x3] ss:$9 sm:$0xff] %v502_v8  ;;  %s499_s30 = scalar_lea.vmem %s1243_s9, %s974_s26 }
  0x14   : > { %v504_v7 = vunpack.c.l.b16 %v501_v6  ;;  %975 = vmatmul.msk.bf16.vlgmr.msra.gmra.mxu0 %vm534_vm1, %v501_v6  ;;  %v1036_v20 = vld [vmem:[%s1239_s5] ss:$0 sm:$0xff] }
  0x16   : > { %v505_v9 = vpack.c.b16 %v504_v7, %v504_v7 }
  0x18   : > { %v507_v10 = vshrl.u32 %v505_v9, 16  ;;  %v510_v11 = vshll.u32 %v505_v9, 16 }
  0x1a   : > { %v509_v12 = vrot.slane %v507_v10, 7  ;;  %v518_v13 = vrot.slane %v510_v11, 1  ;;  %v524_v16 = vld [vmem:[#allocation1] sm:$0xff] }
  0x1c   : > { %v512_v14 = vor.u32 %v510_v11, %v509_v12  ;;  %v519_v15 = vor.u32 %v518_v13, %v507_v10 }
  0x1e   : > { %v517_v17 = vsel %vm516_vm6, %v502_v8, %v512_v14  ;;  %v529_v18 = vsel %vm528_vm7, %v519_v15, %v524_v16 }
  0x1f   : > { %976 = vmatmul.msk.bf16.vlgmr.msra.gmra.mxu1 %vm534_vm1, %v517_v17  ;;  %977 = vmatmul.msk.bf16.vlgmr.msra.gmra.mxu2 %vm534_vm1, %v529_v18 }
  0x84   : > { %v617_v6 = vpop.permute.xlu1 %616 }
  0x91   : > { %v554_v21 = vpop.f32.mrf.mxu0 }
  0x92   : > { %v1195_v22 = vadd.f32 %v1036_v20, %v554_v21 }
  0x94   : > { %v621_v23 = vmul.f32 0.70710677, %v1195_v22  ;;  %v620_v0 = vmul.f32 0.5, %v1195_v22 }
  0x96   : > { %v622_v24 = vmul.f32 %v621_v23, %v621_v23 }
  0x98   : > { %v623_v25 = vmin.f32 %v622_v24, 16.0 }
  0x99   : > { %v556_v26 = vpop.f32.mrf.mxu0 }
  0x9a   : > { %v624_v27 = vmul.f32 2.1237322e-06, %v623_v25  ;;  %v635_v28 = vmul.f32 3.8918573e-05, %v623_v25 }
  0x9c   : > { %v625_v29 = vadd.f32 0.00028619796, %v624_v27  ;;  %v579_v30 = vpop.f32.mrf.mxu1  ;;  %v636_v31 = vadd.f32 0.001143296, %v635_v28 }
  0x9d   : > { %584 = vrot.lane.b32.xlu0 %v579_v30, %s1083_s17 }
  0x9e   : > { %v626_v32 = vmul.f32 %v625_v29, %v623_v25  ;;  %v637_v33 = vmul.f32 %v636_v31, %v623_v25 }
  0xa0   : > { %v627_v34 = vadd.f32 0.0036580483, %v626_v32  ;;  %v638_v35 = vadd.f32 0.014752088, %v637_v33 }
  0xa2   : > { %v604_v36 = vpop.f32.mrf.mxu2  ;;  %v639_v37 = vmul.f32 %v638_v35, %v623_v25  ;;  %v628_v38 = vmul.f32 %v627_v34, %v623_v25 }
  0xa4   : > { %v581_v39 = vpop.f32.mrf.mxu1  ;;  %v640_v40 = vadd.f32 0.112945676, %v639_v37  ;;  %v629_v42 = vadd.f32 0.05243302, %v628_v38 }
  0xa5   : > { %609 = vrot.lane.b32.xlu0 %v604_v36, %s1083_s17 }
  0xa6   : > { %v641_v41 = vmul.f32 %v640_v40, %v623_v25  ;;  %v630_v46 = vmul.f32 %v629_v42, %v623_v25 }
  0xa8   : > { %v642_v43 = vadd.f32 0.4994258, %v641_v41  ;;  %v631_v48 = vadd.f32 0.18741608, %v630_v46 }
  0xaa   : > { %v606_v44 = vpop.f32.mrf.mxu2  ;;  %v643_v45 = vmul.f32 %v642_v43, %v623_v25  ;;  %v632_v50 = vmul.f32 %v631_v48, %v623_v25 }
  0xac   : > { %v644_v47 = vadd.f32 1.0, %v643_v45  ;;  %v633_v54 = vadd.f32 1.1283791, %v632_v50 }
  0xae   : > { %1039 = vrcp.f32 %v644_v47  ;;  %v656_v52 = vand.u32 2147483648, %v644_v47  ;;  %vm650_vm8 = vweird.f32 %v644_v47  ;;  %v654_v56 = vand.u32 2147483647, %v644_v47 }
  0xaf   : > { %v634_v59 = vmul.f32 %v633_v54, %v621_v23 }
  0xb0   : > { %v657_v57 = vor.u32 1.1754944e-38, %v656_v52  ;;  %vm655_vm11 = vcmp.eq.f32.partialorder %v654_v56, 8.507059e+37  ;;  %v991_v52 = vld [vmem:[%s1241_s7] sm:$0xff] }
  0xb4   : > { %v1040_v49 = vpop.eup %1039 }
  0xb5   : > { %v646_v51 = vmul.f32 %v1040_v49, %v644_v47  ;;  %vm651_vm9 = vweird.f32 %v1040_v49 }
  0xb6   : > { %vm652_vm10 = vmor %vm650_vm8, %vm651_vm9 }
  0xb7   : > { %v647_v53 = vsub.f32 1.0, %v646_v51  ;;  %v992_v51 = vld [vmem:[%s1241_s7 + $0x8] sm:$0xff] }
  0xb8   : > { %751 = vmatpush.bf16.msra.mxu3 %v992_v51 }
  0xb9   : > { %v648_v55 = vmul.f32 %v1040_v49, %v647_v53  ;;  %v1085_v53 = vmov 0.0  }
  0xba   : > { %535 = vst.msk [vmem:[#allocation2] sm:$0xff] %vm534_vm1, %v1085_v53 }
  0xbb   : > { %v649_v58 = vadd.f32 %v1040_v49, %v648_v55 }
  0xbc   : > { %752 = vmatpush.bf16.msra.mxu3 %v991_v52 }
  0xbd   : > { %v653_v60 = vsel %vm652_vm10, %v1040_v49, %v649_v58 }
  0xbe   : > { %v658_v61 = vsel %vm655_vm11, %v657_v57, %v653_v60 }
  0xbf   : > { %v659_v62 = vmul.f32 %v658_v61, %v634_v59 }
  0xc1   : > { %v978_v63 = vclamps-f32 %v659_v62, 1.0  ;;  %v724_v59 = vld [vmem:[#allocation2] sm:$0xff]  ;;  %v1038_v62 = vld [vmem:[%s1242_s8] ss:$0 sm:$0xff] }
  0xc3   : > { %v662_v1 = vadd.f32 1.0, %v978_v63 }
  0xc5   : > { %v663_v2 = vmul.f32 %v662_v1, %v620_v0 }
  0xc7   : > { %714 = vrot.lane.b32.xlu1 %v663_v2, %s1083_s17 }
 0x10f   : > { %v585_v3 = vpop.permute.xlu0 %584 }
 0x110   : > { %v587_v4 = vadd.f32 %v585_v3, %v554_v21 }
 0x117   : > { %v610_v5 = vpop.permute.xlu0 %609 }
 0x118   : > { %v612_v7 = vadd.f32 %v610_v5, %v587_v4 }
 0x11a   : > { %v619_v8 = vadd.f32 %v617_v6, %v612_v7 }
 0x11c   : > { %v665_v9 = vmul.f32 0.70710677, %v619_v8  ;;  %v664_v46 = vmul.f32 0.5, %v619_v8 }
 0x11e   : > { %v666_v10 = vmul.f32 %v665_v9, %v665_v9 }
 0x120   : > { %v667_v11 = vmin.f32 %v666_v10, 16.0 }
 0x122   : > { %v668_v12 = vmul.f32 2.1237322e-06, %v667_v11  ;;  %v679_v13 = vmul.f32 3.8918573e-05, %v667_v11 }
 0x124   : > { %v669_v14 = vadd.f32 0.00028619796, %v668_v12  ;;  %v680_v15 = vadd.f32 0.001143296, %v679_v13 }
 0x126   : > { %v670_v16 = vmul.f32 %v669_v14, %v667_v11  ;;  %v681_v17 = vmul.f32 %v680_v15, %v667_v11 }
 0x128   : > { %v682_v18 = vadd.f32 0.014752088, %v681_v17  ;;  %v671_v19 = vadd.f32 0.0036580483, %v670_v16 }
 0x12a   : > { %v683_v20 = vmul.f32 %v682_v18, %v667_v11  ;;  %v672_v24 = vmul.f32 %v671_v19, %v667_v11 }
 0x12c   : > { %v684_v23 = vadd.f32 0.112945676, %v683_v20  ;;  %v673_v26 = vadd.f32 0.05243302, %v672_v24 }
 0x12e   : > { %v685_v25 = vmul.f32 %v684_v23, %v667_v11  ;;  %v674_v29 = vmul.f32 %v673_v26, %v667_v11 }
 0x130   : > { %v686_v21 = vadd.f32 0.4994258, %v685_v25  ;;  %v675_v30 = vadd.f32 0.18741608, %v674_v29 }
 0x132   : > { %v687_v27 = vmul.f32 %v686_v21, %v667_v11  ;;  %v676_v32 = vmul.f32 %v675_v30, %v667_v11 }
 0x134   : > { %v688_v28 = vadd.f32 1.0, %v687_v27  ;;  %v677_v36 = vadd.f32 1.1283791, %v676_v32 }
 0x136   : > { %1041 = vrcp.f32 %v688_v28  ;;  %v700_v35 = vand.u32 2147483648, %v688_v28  ;;  %v698_v38 = vand.u32 2147483647, %v688_v28  ;;  %vm694_vm13 = vweird.f32 %v688_v28 }
 0x137   : > { %v678_v41 = vmul.f32 %v677_v36, %v665_v9 }
 0x138   : > { %v701_v40 = vor.u32 1.1754944e-38, %v700_v35  ;;  %vm699_vm15 = vcmp.eq.f32.partialorder %v698_v38, 8.507059e+37 }
 0x139   : > { %v715_v49 = vpop.permute.xlu1 %714 }
 0x13a   : > { %v717_v50 = vmul.f32 %v715_v49, %v619_v8 }
 0x13c   : > { %v1042_v31 = vpop.eup %1041 }
 0x13d   : > { %v690_v33 = vmul.f32 %v1042_v31, %v688_v28  ;;  %vm695_vm12 = vweird.f32 %v1042_v31 }
 0x13e   : > { %vm696_vm14 = vmor %vm694_vm13, %vm695_vm12 }
 0x13f   : > { %v691_v34 = vsub.f32 1.0, %v690_v33 }
 0x141   : > { %v692_v37 = vmul.f32 %v1042_v31, %v691_v34 }
 0x143   : > { %v693_v39 = vadd.f32 %v1042_v31, %v692_v37 }
 0x145   : > { %v697_v42 = vsel %vm696_vm14, %v1042_v31, %v693_v39 }
 0x146   : > { %v702_v43 = vsel %vm699_vm15, %v701_v40, %v697_v42 }
 0x147   : > { %v703_v44 = vmul.f32 %v702_v43, %v678_v41 }
 0x149   : > { %v979_v45 = vclamps-f32 %v703_v44, 1.0 }
 0x14b   : > { %v706_v47 = vadd.f32 1.0, %v979_v45 }
 0x14d   : > { %v707_v48 = vmul.f32 %v706_v47, %v664_v46 }
 0x14f   : > { %709 = vrot.lane.b32.xlu2 %v707_v48, %s1084_s20 }
 0x157   : > { %719 = vrot.lane.b32.xlu2 %v717_v50, %s1084_s20 }
 0x1a9   : > { %v710_v54 = vpop.permute.xlu2 %709 }
 0x1aa   : > { %v712_v55 = vmul.f32 %v710_v54, %v1195_v22 }
 0x1b1   : > { %v720_v56 = vpop.permute.xlu2 %719 }
 0x1b2   : > { %v722_v57 = vadd.f32 %v720_v56, %v712_v55 }
 0x1b4   : > { %v723_v58 = vpack.c.bf16 %v722_v57, %v722_v57 }
 0x1b6   : > { %988 = vmatmul.msk.bf16.vlgmr.msra.gmra.mxu3 %vm741_vm0, %v723_v58 }
 0x239   : > { %v754_v60 = vpop.f32.mrf.mxu3 }
 0x23a   : > { %v758_v61 = vadd.f32 %v754_v60, %v724_v59 }
 0x23c   : > { %759 = vst.msk [vmem:[#allocation2] sm:$0xff] %vm534_vm1, %v758_v61 }
 0x241   : > { %v756_v63 = vpop.f32.mrf.mxu3 }
 0x243   : > { %v763_v22 = vld [vmem:[#allocation2] sm:$0xff] }
 0x244   : > { %v768_v0 = vadd.f32 %v1038_v62, %v763_v22 }
 0x246   : > { %769 = vst.msk [vmem:[%s499_s30] sm:$0xff] %vm534_vm1, %v768_v0 }
 0x247 PF: > { %s19_s13 = sadd.s32 1, %s1081_s13   ;;  %s1244_s30 = smov %s1073_s11 }
 0x248   : > { %p16_p7 = scmp.ge.s32.totalorder %s19_s13, 6   ;;  %s1245_s10 = smov %s1077_s12 }
 0x249   : > { %s1246_s11 = smov %s1249_s14  ;;  %s1247_s12 = smov %s1253_s15 }
 0x24a   :  { %18 = sbr.rel (!%p16_p7) target bundleno = 3 (0x3), region = 116 }

</bundles_post_ra>
